<compile_context>
chip_gen: v7x
topology: tpu7x:2x2x1
jax: 0.10.0
libtpu: 0.0.40
codegen_flags: <defaults>
</compile_context>

<pallas_src>
import functools

import jax
import jax.numpy as jnp
from jax import lax
from jax.experimental import pallas as pl
from jax.experimental.pallas import tpu as pltpu


def _round_up(x, m):
    return (x + m - 1) // m * m


def _cdiv(a, b):
    return (a + b - 1) // b


def _sublane(dtype):
    return max(8, 32 // jnp.dtype(dtype).itemsize)


def _vmem_limit_bytes():
    cap = 64 * 1024 * 1024
    try:
        info = pltpu.get_tpu_info()
        cap = int(getattr(info, "vmem_capacity_bytes", cap))
    except Exception:
        pass
    # ~48 MiB fallback is safe on v5e/v6e/v7x; use ~3/4 of VMEM when known.
    return max(32 * 1024 * 1024, min(cap * 3 // 4, 100 * 1024 * 1024))


def _conv1d_bn_act_kernel(x_hbm, w_ref, b_ref, o_ref, xbuf, sem, *,
                          k_size, dilation, stride, tile_w, x_tile, n_inner,
                          ac_func):
    # x_hbm : (stride, C_in_pad, total_cols) HBM ref (pl.ANY), phase-split.
    # w_ref : (C_out_pad, K*C_in_pad) VMEM  -- BN scale folded, tap-major rows.
    # b_ref : (C_out_pad, 1) VMEM           -- folded BN bias (f32).
    # o_ref : (C_out_pad, tile_w) VMEM      -- lane-dense output tile.
    # xbuf  : (2, stride, C_in_pad, x_tile) VMEM double buffer.
    # sem   : (2,) DMA semaphores.
    outer = pl.program_id(0)
    inner = pl.program_id(1)
    tile = outer * n_inner + inner
    slot = inner % 2

    def window_copy(tile_index, buf_slot):
        off = tile_index * tile_w
        if not isinstance(off, int):
            off = pl.multiple_of(off, 128)
        return pltpu.make_async_copy(
            x_hbm.at[:, :, pl.ds(off, x_tile)],
            xbuf.at[buf_slot],
            sem.at[buf_slot])

    # Prime the pipeline on the first inner step of this core's sequence.
    @pl.when(inner == 0)
    def _():
        window_copy(tile, slot).start()

    # Prefetch the next tile's window into the other slot (overlaps compute).
    @pl.when(inner + 1 < n_inner)
    def _():
        window_copy(tile + 1, 1 - slot).start()

    window_copy(tile, slot).wait()

    xw = xbuf.at[slot]                       # (stride, C_in_pad, x_tile) view
    taps = []
    for kk in range(k_size):                 # static, tiny
        phase = (kk * dilation) % stride     # static ints -> contiguous vld
        off = (kk * dilation) // stride
        taps.append(xw[phase, :, off:off + tile_w])
    x_col = taps[0] if k_size == 1 else jnp.concatenate(taps, axis=0)

    # Single MXU matmul over the whole (batch-folded) lane tile.
    acc = jnp.dot(w_ref[...], x_col, preferred_element_type=jnp.float32)
    y = acc + b_ref[...]                     # fused eval-mode BN bias (f32)
    if ac_func == 'Relu':
        y = jnp.maximum(y, 0.0)
    elif ac_func == 'LeakyRelu':
        y = jnp.where(y >= 0.0, y, 0.01 * y)
    elif ac_func == 'Mish':
        y = y * jnp.tanh(jnp.logaddexp(y, 0.0))
    # else: Identity (matches the PyTorch module's fall-through).
    o_ref[...] = y.astype(o_ref.dtype)


@functools.partial(jax.jit,
                   static_argnames=("stride", "padding", "dilation", "eps",
                                    "ac_func"))
def conv1d_bn_act(x, weight, gamma, beta, running_mean, running_var, *,
                  stride=1, padding=0, dilation=1, eps=1e-5, ac_func='Relu'):
    """Pallas fused Conv1d (bias=False) + BatchNorm1d (eval) + activation."""
    if ac_func == 'PRelu':
        # TODO(synk): PReLU needs the learned slope parameter; not implemented.
        raise NotImplementedError("PRelu activation is not supported")

    n, c_in, l = x.shape
    c_out, c_in_w, k = weight.shape
    assert c_in == c_in_w
    l_out = (l + 2 * padding - dilation * (k - 1) - 1) // stride + 1
    assert l_out > 0

    itemsize = jnp.dtype(x.dtype).itemsize
    sub = _sublane(x.dtype)
    c_in_pad = _round_up(c_in, sub)
    c_out_pad = _round_up(c_out, sub)

    l_pad = l + 2 * padding
    l_slot = _round_up(l_pad, stride)          # per-batch slot, mult of stride
    cols_per_batch = l_slot // stride
    w_cols = n * cols_per_batch                # flat output cols (incl. junk)

    # ---- Tile sizing: wide lane-dense tiles bounded by a VMEM budget. ----
    vmem_limit = _vmem_limit_bytes()
    budget = int(vmem_limit * 0.7)

    def vmem_estimate(tw):
        xt_cols = _round_up(tw + ((k - 1) * dilation) // stride, 128)
        return (2 * stride * c_in_pad * xt_cols * itemsize   # x double buffer
                + 2 * c_out_pad * tw * itemsize              # out double buffer
                + 2 * k * c_in_pad * tw * itemsize           # taps + concat
                + 2 * c_out_pad * tw * 4                     # f32 epilogue
                + 2 * c_out_pad * k * c_in_pad * itemsize    # weights
                + (1 << 20))                                 # slack

    tile_w = min(_round_up(w_cols, 128), 2048)
    while tile_w > 128 and vmem_estimate(tile_w) > budget:
        tile_w -= 128

    num_tiles = _cdiv(w_cols, tile_w)
    if num_tiles == 1 and w_cols > 128:
        # Guarantee >= 2 tiles so both v7x TensorCores get work.
        tile_w = _round_up(_cdiv(w_cols, 2), 128)
        num_tiles = _cdiv(w_cols, tile_w)
    if num_tiles >= 2:
        n_outer = 2
        num_tiles = _round_up(num_tiles, 2)
    else:
        n_outer = 1
    n_inner = num_tiles // n_outer
    w_pad = num_tiles * tile_w

    # Per-step x window (halo included) in the phase-split layout.
    x_tile = _round_up(tile_w + ((k - 1) * dilation) // stride, 128)
    p_len = (num_tiles - 1) * tile_w + x_tile      # phase cols the kernel reads
    n_total = max(n, _cdiv(p_len * stride, l_slot))
    total_cols = n_total * l_slot // stride

    # ---- Glue: one transpose+pad pass over x, then free reshapes. ----
    xt = jnp.transpose(x, (1, 0, 2))                           # (c_in, n, l)
    xt = jnp.pad(xt, ((0, c_in_pad - c_in),
                      (0, n_total - n),
                      (padding, l_slot - l - padding)))
    x_flat = xt.reshape(c_in_pad, n_total * l_slot)
    x_ph = jnp.transpose(x_flat.reshape(c_in_pad, total_cols, stride),
                         (2, 0, 1))                  # (stride, c_in_pad, cols)

    # Fold eval-mode BN: scale into the weight, keep only the bias.
    scale = gamma / jnp.sqrt(running_var + eps)
    w_t = jnp.transpose(weight, (0, 2, 1)) * scale[:, None, None]  # (co,k,ci)
    w_t = jnp.pad(w_t, ((0, c_out_pad - c_out), (0, 0), (0, c_in_pad - c_in)))
    # NOTE: folding the scale before the cast rounds differently than
    # conv-then-BN for low-precision dtypes (loosen tolerances for bf16).
    w_folded = w_t.reshape(c_out_pad, k * c_in_pad).astype(x.dtype)
    bias = jnp.pad(beta - running_mean * scale, (0, c_out_pad - c_out))
    bias = bias.reshape(c_out_pad, 1).astype(jnp.float32)

    kernel = functools.partial(
        _conv1d_bn_act_kernel, k_size=k, dilation=dilation, stride=stride,
        tile_w=tile_w, x_tile=x_tile, n_inner=n_inner, ac_func=ac_func)

    out_flat = pl.pallas_call(
        kernel,
        out_shape=jax.ShapeDtypeStruct((c_out_pad, w_pad), x.dtype),
        grid_spec=pltpu.PrefetchScalarGridSpec(
            num_scalar_prefetch=0,
            grid=(n_outer, n_inner),
            in_specs=[
                pl.BlockSpec(memory_space=pl.ANY),           # x stays in HBM
                pl.BlockSpec((c_out_pad, k * c_in_pad), lambda o, i: (0, 0)),
                pl.BlockSpec((c_out_pad, 1), lambda o, i: (0, 0)),
            ],
            out_specs=pl.BlockSpec((c_out_pad, tile_w),
                                   lambda o, i: (0, o * n_inner + i)),
            scratch_shapes=[
                pltpu.VMEM((2, stride, c_in_pad, x_tile), x.dtype),
                pltpu.SemaphoreType.DMA((2,)),
            ]),
        compiler_params=pltpu.CompilerParams(
            dimension_semantics=("parallel", "arbitrary"),
            vmem_limit_bytes=vmem_limit),
    )(x_ph, w_folded, bias)

    # Drop batch-boundary / lane-padding junk with a contiguous reshape+slice
    # (no gather), then restore the PyTorch (N, C_out, L_out) layout.
    out = out_flat[:c_out, :w_cols].reshape(c_out, n, cols_per_batch)
    out = out[:, :, :l_out]
    return jnp.transpose(out, (1, 0, 2))


def _reference(x, weight, gamma, beta, running_mean, running_var, *,
               stride, padding, dilation, eps, ac_func):
    # Pure-JAX reference (mirrors PyTorch conv1d + eval-mode BN + activation).
    out = jax.lax.conv_general_dilated(
        x, weight,
        window_strides=(stride,),
        padding=[(padding, padding)],
        rhs_dilation=(dilation,),
        dimension_numbers=('NCH', 'OIH', 'NCH'),
    )
    scale = gamma / jnp.sqrt(running_var + eps)
    bias = beta - running_mean * scale
    out = out * scale[None, :, None] + bias[None, :, None]
    if ac_func == 'Relu':
        out = jnp.maximum(out, 0.0)
    elif ac_func == 'LeakyRelu':
        out = jnp.where(out >= 0.0, out, 0.01 * out)
    elif ac_func == 'Mish':
        out = out * jnp.tanh(jnp.logaddexp(out, 0.0))
    return out


if __name__ == "__main__":
    # Module config: Conv1d(ch_in=4, ch_out=8, k=3, s=1, p=1, d=1, ac_func='Relu')
    N, C_IN, C_OUT, L, K = 2, 4, 8, 16, 3
    S, P, D = 1, 1, 1
    EPS = 1e-5

    key = jax.random.PRNGKey(0)
    kx, kw, kg, kb, km, kv = jax.random.split(key, 6)

    x = jax.random.normal(kx, (N, C_IN, L), dtype=jnp.float32)
    # Kaiming-uniform-like deterministic init for the conv weight (no bias).
    fan_in = C_IN * K
    bound = (1.0 / fan_in) ** 0.5
    weight = jax.random.uniform(kw, (C_OUT, C_IN, K), dtype=jnp.float32,
                                minval=-bound, maxval=bound)
    # BatchNorm1d parameters / running stats (deterministic, non-trivial).
    gamma = 1.0 + 0.1 * jax.random.normal(kg, (C_OUT,), dtype=jnp.float32)
    beta = 0.1 * jax.random.normal(kb, (C_OUT,), dtype=jnp.float32)
    running_mean = 0.1 * jax.random.normal(km, (C_OUT,), dtype=jnp.float32)
    running_var = 1.0 + 0.1 * jax.random.uniform(kv, (C_OUT,), dtype=jnp.float32)

    out = conv1d_bn_act(x, weight, gamma, beta, running_mean, running_var,
                        stride=S, padding=P, dilation=D, eps=EPS,
                        ac_func='Relu')
    out = jax.block_until_ready(out)

    ref = _reference(x, weight, gamma, beta, running_mean, running_var,
                     stride=S, padding=P, dilation=D, eps=EPS, ac_func='Relu')
    assert out.shape == (N, C_OUT, (L + 2 * P - D * (K - 1) - 1) // S + 1)
    assert jnp.allclose(out, ref, atol=1e-4, rtol=1e-4)

    print("KERNEL_OK")
</pallas_src>

<mosaic_0001>
module attributes {stable_mosaic.version = 11 : i64} {
  func.func @_conv1d_bn_act_kernel(%arg0: i32, %arg1: i32, %arg2: memref<1x8x270xf32, #tpu.memory_space<any>>, %arg3: memref<8x24xf32, #tpu.memory_space<vmem>>, %arg4: memref<8x1xf32, #tpu.memory_space<vmem>>, %arg5: memref<8x128xf32, #tpu.memory_space<vmem>>, %arg6: memref<2x1x8x256xf32, #tpu.memory_space<vmem>>, %arg7: memref<2x!tpu.dma_semaphore, #tpu.memory_space<semaphore_mem>>) attributes {dimension_semantics = [#tpu.dimension_semantics<parallel>, #tpu.dimension_semantics<arbitrary>], iteration_bounds = array<i64: 1, 1>, scalar_prefetch = 0 : i64, scratch_operands = 2 : i64, tpu.core_type = #tpu.core_type<tc>, window_params = [{}, {pipeline_mode = #tpu.pipeline_mode<synchronous>, transform_indices = @transform_1, window_bounds = array<i64: 8, 24>}, {pipeline_mode = #tpu.pipeline_mode<synchronous>, transform_indices = @transform_2, window_bounds = array<i64: 8, 1>}, {transform_indices = @transform_3, window_bounds = array<i64: 8, 128>}]} {
    %c1_i32 = arith.constant 1 : i32
    %0 = arith.muli %arg0, %c1_i32 : i32
    %1 = arith.addi %0, %arg1 : i32
    %c2_i32 = arith.constant 2 : i32
    %c0_i32 = arith.constant 0 : i32
    %2 = arith.cmpi eq, %c2_i32, %c0_i32 : i32
    %c1_i32_0 = arith.constant 1 : i32
    %3 = arith.select %2, %c1_i32_0, %c2_i32 : i32
    %4 = arith.remsi %arg1, %3 : i32
    %c0_i32_1 = arith.constant 0 : i32
    %5 = arith.cmpi ne, %4, %c0_i32_1 : i32
    %c0_i32_2 = arith.constant 0 : i32
    %6 = arith.cmpi slt, %4, %c0_i32_2 : i32
    %c0_i32_3 = arith.constant 0 : i32
    %7 = arith.cmpi slt, %3, %c0_i32_3 : i32
    %8 = arith.xori %6, %7 : i1
    %9 = arith.andi %8, %5 : i1
    %10 = arith.addi %4, %3 : i32
    %11 = arith.select %9, %10, %4 : i32
    %c0_i32_4 = arith.constant 0 : i32
    %12 = arith.cmpi eq, %arg1, %c0_i32_4 : i32
    %13 = arith.extui %12 : i1 to i32
    %c0_i32_5 = arith.constant 0 : i32
    %14 = arith.cmpi ne, %13, %c0_i32_5 : i32
    scf.if %14 {
      %c128_i32_36 = arith.constant 128 : i32
      %47 = arith.muli %1, %c128_i32_36 : i32
      %48 = tpu.assume_multiple %47, 128 : i32
      %c0_i32_37 = arith.constant 0 : i32
      %c0_i32_38 = arith.constant 0 : i32
      %49 = tpu.memref_slice %arg2[%c0_i32_37, %c0_i32_38, %48] : memref<1x8x270xf32, #tpu.memory_space<any>> -> memref<1x8x256xf32, #tpu.memory_space<any>>
      %c0_i32_39 = arith.constant 0 : i32
      %c0_i32_40 = arith.constant 0 : i32
      %c0_i32_41 = arith.constant 0 : i32
      %50 = tpu.memref_slice %arg6[%11, %c0_i32_39, %c0_i32_40, %c0_i32_41] : memref<2x1x8x256xf32, #tpu.memory_space<vmem>> -> memref<1x1x8x256xf32, #tpu.memory_space<vmem>>
      %51 = tpu.memref_squeeze %50 : memref<1x1x8x256xf32, #tpu.memory_space<vmem>> -> memref<1x8x256xf32, #tpu.memory_space<vmem>>
      %52 = tpu.memref_slice %arg7[%11] : memref<2x!tpu.dma_semaphore, #tpu.memory_space<semaphore_mem>> -> memref<1x!tpu.dma_semaphore, #tpu.memory_space<semaphore_mem>>
      %53 = tpu.memref_squeeze %52 : memref<1x!tpu.dma_semaphore, #tpu.memory_space<semaphore_mem>> -> memref<!tpu.dma_semaphore, #tpu.memory_space<semaphore_mem>>
      tpu.enqueue_dma source(%49 : memref<1x8x256xf32, #tpu.memory_space<any>>) target(%51 : memref<1x8x256xf32, #tpu.memory_space<vmem>>) target_semaphore(%53 : memref<!tpu.dma_semaphore, #tpu.memory_space<semaphore_mem>>)
    } else {
    }
    %c1_i32_6 = arith.constant 1 : i32
    %15 = arith.addi %arg1, %c1_i32_6 : i32
    %c1_i32_7 = arith.constant 1 : i32
    %16 = arith.cmpi slt, %15, %c1_i32_7 : i32
    %17 = arith.extui %16 : i1 to i32
    %c0_i32_8 = arith.constant 0 : i32
    %18 = arith.cmpi ne, %17, %c0_i32_8 : i32
    scf.if %18 {
      %c1_i32_36 = arith.constant 1 : i32
      %47 = arith.addi %1, %c1_i32_36 : i32
      %c1_i32_37 = arith.constant 1 : i32
      %48 = arith.subi %c1_i32_37, %11 : i32
      %c128_i32_38 = arith.constant 128 : i32
      %49 = arith.muli %47, %c128_i32_38 : i32
      %50 = tpu.assume_multiple %49, 128 : i32
      %c0_i32_39 = arith.constant 0 : i32
      %c0_i32_40 = arith.constant 0 : i32
      %51 = tpu.memref_slice %arg2[%c0_i32_39, %c0_i32_40, %50] : memref<1x8x270xf32, #tpu.memory_space<any>> -> memref<1x8x256xf32, #tpu.memory_space<any>>
      %c0_i32_41 = arith.constant 0 : i32
      %c0_i32_42 = arith.constant 0 : i32
      %c0_i32_43 = arith.constant 0 : i32
      %52 = tpu.memref_slice %arg6[%48, %c0_i32_41, %c0_i32_42, %c0_i32_43] : memref<2x1x8x256xf32, #tpu.memory_space<vmem>> -> memref<1x1x8x256xf32, #tpu.memory_space<vmem>>
      %53 = tpu.memref_squeeze %52 : memref<1x1x8x256xf32, #tpu.memory_space<vmem>> -> memref<1x8x256xf32, #tpu.memory_space<vmem>>
      %54 = tpu.memref_slice %arg7[%48] : memref<2x!tpu.dma_semaphore, #tpu.memory_space<semaphore_mem>> -> memref<1x!tpu.dma_semaphore, #tpu.memory_space<semaphore_mem>>
      %55 = tpu.memref_squeeze %54 : memref<1x!tpu.dma_semaphore, #tpu.memory_space<semaphore_mem>> -> memref<!tpu.dma_semaphore, #tpu.memory_space<semaphore_mem>>
      tpu.enqueue_dma source(%51 : memref<1x8x256xf32, #tpu.memory_space<any>>) target(%53 : memref<1x8x256xf32, #tpu.memory_space<vmem>>) target_semaphore(%55 : memref<!tpu.dma_semaphore, #tpu.memory_space<semaphore_mem>>)
    } else {
    }
    %c128_i32 = arith.constant 128 : i32
    %19 = arith.muli %1, %c128_i32 : i32
    %20 = tpu.assume_multiple %19, 128 : i32
    %c0_i32_9 = arith.constant 0 : i32
    %c0_i32_10 = arith.constant 0 : i32
    %21 = tpu.memref_slice %arg2[%c0_i32_9, %c0_i32_10, %20] : memref<1x8x270xf32, #tpu.memory_space<any>> -> memref<1x8x256xf32, #tpu.memory_space<any>>
    %c0_i32_11 = arith.constant 0 : i32
    %c0_i32_12 = arith.constant 0 : i32
    %c0_i32_13 = arith.constant 0 : i32
    %22 = tpu.memref_slice %arg6[%11, %c0_i32_11, %c0_i32_12, %c0_i32_13] : memref<2x1x8x256xf32, #tpu.memory_space<vmem>> -> memref<1x1x8x256xf32, #tpu.memory_space<vmem>>
    %23 = tpu.memref_squeeze %22 : memref<1x1x8x256xf32, #tpu.memory_space<vmem>> -> memref<1x8x256xf32, #tpu.memory_space<vmem>>
    %24 = tpu.memref_slice %arg7[%11] : memref<2x!tpu.dma_semaphore, #tpu.memory_space<semaphore_mem>> -> memref<1x!tpu.dma_semaphore, #tpu.memory_space<semaphore_mem>>
    %25 = tpu.memref_squeeze %24 : memref<1x!tpu.dma_semaphore, #tpu.memory_space<semaphore_mem>> -> memref<!tpu.dma_semaphore, #tpu.memory_space<semaphore_mem>>
    tpu.wait_dma2 semaphore(%25 : memref<!tpu.dma_semaphore, #tpu.memory_space<semaphore_mem>>) src(%21 : memref<1x8x256xf32, #tpu.memory_space<any>>) dst(%23 : memref<1x8x256xf32, #tpu.memory_space<vmem>>)
    %c0_i32_14 = arith.constant 0 : i32
    %c0_i32_15 = arith.constant 0 : i32
    %c0_i32_16 = arith.constant 0 : i32
    %26 = tpu.memref_slice %arg6[%11, %c0_i32_14, %c0_i32_15, %c0_i32_16] : memref<2x1x8x256xf32, #tpu.memory_space<vmem>> -> memref<1x1x8x256xf32, #tpu.memory_space<vmem>>
    %27 = tpu.memref_squeeze %26 : memref<1x1x8x256xf32, #tpu.memory_space<vmem>> -> memref<1x8x256xf32, #tpu.memory_space<vmem>>
    %c0 = arith.constant 0 : index
    %c0_17 = arith.constant 0 : index
    %c0_18 = arith.constant 0 : index
    %28 = vector.load %27[%c0, %c0_17, %c0_18] : memref<1x8x256xf32, #tpu.memory_space<vmem>>, vector<1x8x128xf32>
    %29 = vector.shape_cast %28 : vector<1x8x128xf32> to vector<8x128xf32>
    %c0_i32_19 = arith.constant 0 : i32
    %c0_i32_20 = arith.constant 0 : i32
    %c0_i32_21 = arith.constant 0 : i32
    %30 = tpu.memref_slice %arg6[%11, %c0_i32_19, %c0_i32_20, %c0_i32_21] : memref<2x1x8x256xf32, #tpu.memory_space<vmem>> -> memref<1x1x8x256xf32, #tpu.memory_space<vmem>>
    %31 = tpu.memref_squeeze %30 : memref<1x1x8x256xf32, #tpu.memory_space<vmem>> -> memref<1x8x256xf32, #tpu.memory_space<vmem>>
    %c0_22 = arith.constant 0 : index
    %c0_23 = arith.constant 0 : index
    %c1 = arith.constant 1 : index
    %32 = vector.load %31[%c0_22, %c0_23, %c1] : memref<1x8x256xf32, #tpu.memory_space<vmem>>, vector<1x8x128xf32>
    %33 = vector.shape_cast %32 : vector<1x8x128xf32> to vector<8x128xf32>
    %c0_i32_24 = arith.constant 0 : i32
    %c0_i32_25 = arith.constant 0 : i32
    %c0_i32_26 = arith.constant 0 : i32
    %34 = tpu.memref_slice %arg6[%11, %c0_i32_24, %c0_i32_25, %c0_i32_26] : memref<2x1x8x256xf32, #tpu.memory_space<vmem>> -> memref<1x1x8x256xf32, #tpu.memory_space<vmem>>
    %35 = tpu.memref_squeeze %34 : memref<1x1x8x256xf32, #tpu.memory_space<vmem>> -> memref<1x8x256xf32, #tpu.memory_space<vmem>>
    %c0_27 = arith.constant 0 : index
    %c0_28 = arith.constant 0 : index
    %c2 = arith.constant 2 : index
    %36 = vector.load %35[%c0_27, %c0_28, %c2] : memref<1x8x256xf32, #tpu.memory_space<vmem>>, vector<1x8x128xf32>
    %37 = vector.shape_cast %36 : vector<1x8x128xf32> to vector<8x128xf32>
    %38 = tpu.concatenate %29, %33, %37 in 0 : vector<8x128xf32>, vector<8x128xf32>, vector<8x128xf32> -> vector<24x128xf32>
    %c0_29 = arith.constant 0 : index
    %c0_30 = arith.constant 0 : index
    %39 = vector.load %arg3[%c0_29, %c0_30] : memref<8x24xf32, #tpu.memory_space<vmem>>, vector<8x24xf32>
    %cst = arith.constant dense<0.000000e+00> : vector<8x128xf32>
    %40 = tpu.matmul %39, %38, %cst {dimension_numbers = #tpu.dot_dimension_numbers<[1], [0], [0], [1], [0, 0, 1, 1], [], []>} : vector<8x24xf32>, vector<24x128xf32>, vector<8x128xf32> -> vector<8x128xf32>
    %c0_31 = arith.constant 0 : index
    %c0_32 = arith.constant 0 : index
    %41 = vector.load %arg4[%c0_31, %c0_32] : memref<8x1xf32, #tpu.memory_space<vmem>>, vector<8x1xf32>
    %42 = vector.broadcast %41 : vector<8x1xf32> to vector<8x128xf32>
    %43 = arith.addf %40, %42 : vector<8x128xf32>
    %cst_33 = arith.constant 0.000000e+00 : f32
    %44 = vector.broadcast %cst_33 : f32 to vector<8x128xf32>
    %45 = arith.maximumf %43, %44 : vector<8x128xf32>
    %c0_34 = arith.constant 0 : index
    %c0_35 = arith.constant 0 : index
    %46 = vector.load %arg5[%c0_34, %c0_35] : memref<8x128xf32, #tpu.memory_space<vmem>>, vector<8x128xf32>
    tpu.vector_store %arg5[%c0_34, %c0_35], %45 {strides = array<i32>} : memref<8x128xf32, #tpu.memory_space<vmem>>, vector<8x128xf32>,
    return
  }
  func.func @transform_1(%arg0: i32, %arg1: i32) -> (i32, i32) {
    %c0_i32 = arith.constant 0 : i32
    %c0_i32_0 = arith.constant 0 : i32
    %c0_i32_1 = arith.constant 0 : i32
    return %c0_i32, %c0_i32_0 : i32, i32
  }
  func.func @transform_2(%arg0: i32, %arg1: i32) -> (i32, i32) {
    %c0_i32 = arith.constant 0 : i32
    %c0_i32_0 = arith.constant 0 : i32
    %c0_i32_1 = arith.constant 0 : i32
    return %c0_i32, %c0_i32_0 : i32, i32
  }
  func.func @transform_3(%arg0: i32, %arg1: i32) -> (i32, i32) {
    %c1_i32 = arith.constant 1 : i32
    %0 = arith.muli %arg0, %c1_i32 : i32
    %1 = arith.addi %0, %arg1 : i32
    %c0_i32 = arith.constant 0 : i32
    %c0_i32_0 = arith.constant 0 : i32
    return %c0_i32, %1 : i32, i32
  }
}

</mosaic_0001>

<bundles_post_ra>
// kernel: conv1d_bn_act.1
= control target key start
LH: loop header
LB: loop body
LE: loop exit
PB: predicated region body
PF: predicated region fallthrough
CT: control target
= control target key end

     0   :  { %s404_s0 = inlined_call_operand.vmem [shape: f32[1,8,270], index: 0, kind: input, shape index: {}]   ;;  %s405_s1 = inlined_call_operand.vmem [shape: f32[8,24], index: 1, kind: input, shape index: {}]   ;;  %s406_s2 = inlined_call_operand.vmem [shape: f32[8,1], index: 2, kind: input, shape index: {}]   ;;  %s407_s3 = inlined_call_operand.vmem [shape: f32[8,128], index: 3, kind: output, shape index: {}]  }
   0x1   :  { %v77_v0 = vld [vmem:[%s404_s0] sm:$0xff]  ;;  %v79_v1 = vld [vmem:[%s404_s0 + $0x8] sm:$0xff] }
   0x2   :  { %88 = vsyncadd [#allocation3], 256  ;;  %v354_v2 = vpack.i.bf16 %v79_v1, %v77_v0 }
   0x3   :  { %361 = dma.done.wait [#allocation3], 256 }
   0x4   :  { %362 = vsyncadd [#allocation3], 4294967040  ;;  %s363_s16 = smov 126   ;;  %v364_v3 = vmov 0.0|0.0   ;;  %s365_s17 = smov 127   ;;  %vm366_vm0 = vmmov 0  }
   0x5   :  { %173 = vrot.lane.b32.xlu1 %v79_v1, %s363_s16  ;;  %345 = vmatprep.subr.bf16.mxu0 %v364_v3  ;;  %v367_v4 = vmov 0.0   ;;  %v368_v5 = vmov 0   ;;  %v179_v6 = vld [vmem:[%s406_s2] sm:$0xff]  ;;  %vm168_vm1 = vcmask 1039360   ;;  %vm175_vm2 = vcmask 1031168  }
   0x6   :  { %355 = vrot.lane.b32.xlu0 %v354_v2, %s365_s17  ;;  %342 = vmatprep.mubr.msk.f32.mxu0 %vm366_vm0, %v367_v4  ;;  %v178_v15 = vld [vmem:[%s405_s1] sm:$0xff]  ;;  %vm185_vm3 = vcmask 195584  }
   0x7   :  { %359 = vset.pattern.permute.xlu1 %v368_v5  ;;  %360 = vset.pattern.permute.xlu0 %v368_v5 }
   0x9   :  { %182 = vperm.xlu1 %359, %v179_v6  }
   0xa   :  { %171 = vrot.lane.b32.xlu0 %v77_v0, %s363_s16 }
  0x77   :  { %v174_v12 = vpop.permute.xlu1 %173 }
  0x78   :  { %v356_v7 = vpop.permute.xlu0 %355 }
  0x79   :  { %v358_v8 = vunpack.i.h.bf16 %v356_v7  ;;  %v357_v9 = vunpack.i.l.bf16 %v356_v7 }
  0x7b   :  { %v169_v10 = vsel %vm168_vm1, %v357_v9, %v358_v8 }
  0x7c   :  { %v346_v11 = vpack.c.bf16 %v169_v10, %v77_v0  ;;  %v172_v13 = vpop.permute.xlu0 %171 }
  0x7d   :  { %v176_v14 = vsel %vm175_vm2, %v172_v13, %v174_v12 }
  0x7e   :  { %347 = vmatpush3.bf16.msra.mxu0 %v346_v11 }
  0x7f   :  { %340 = vmatprep.subr.mxu0 %v367_v4 }
  0x82   :  { %341 = vmatpush3.msra.mxu0 %v176_v14 }
  0x83   :  { %343 = vmatmul.mubr.msk.f32.vlgmr.msra.gmra.mrb[0].mxu0 %vm185_vm3, %v178_v15 }
  0x88   :  { %v183_v16 = vpop.permute.xlu1 %182 }
 0x156   :  { %v255_v17 = vpop.f32.mrb[0].mxu0 }
 0x157   :  { %v256_v18 = vadd.f32 %v255_v17, %v183_v16  ;;  %v344_v19 = vpop.f32.mrb[1].mxu0 }
 0x159   :  { %v259_v20 = vmax.f32 %v256_v18, 0.0 }
 0x15b   :  { %260 = vst [vmem:[%s407_s3] sm:$0xff] %v259_v20 }
 0x15c   :  { %276 = vsyncmov [#allocation3] }
 0x15f   :  { %s277_s22 = vpop.sfrf %276 }
 0x160   :  { %p330_p0 = scmp.ne.s32.totalorder %s277_s22, 0 }
 0x162   :  { %281 = shalt.err (%p330_p0)  }
 0x163   :  { %283 = vsyncmov [#allocation3 + $0x1] }
 0x166   :  { %s284_s23 = vpop.sfrf %283 }
 0x167   :  { %p331_p1 = scmp.ne.s32.totalorder %s284_s23, 0 }
 0x169   :  { %288 = shalt.err (%p331_p1)  }

</bundles_post_ra>
